<compile_context>
chip_gen: v6e
topology: v6e:2x2x1
jax: 0.10.0
libtpu: 0.0.40
codegen_flags: <defaults>
</compile_context>

<pallas_src>
import functools

import jax
import jax.numpy as jnp
from jax.experimental import pallas as pl
from jax.experimental.pallas import tpu as pltpu


# Collapse to a single fused invocation when the whole (B, C, HW) slab is small
# (grid/step-overhead bound regime); otherwise stream HW tiles.
_FUSED_SLAB_LIMIT_BYTES = 4 << 20  # per-batch (C, HW) slab


def _tensorcores_per_chip() -> int:
    """Best-effort detection of TensorCores per chip (v7x has 2)."""
    try:
        kind = jax.devices()[0].device_kind.lower()
    except Exception:
        return 1
    return 2 if "v7" in kind else 1


def _pick_hw_tile(C, HW, itemsize, budget_bytes=2 << 20):
    """Largest multiple-of-128 divisor of HW whose (C, tile) block fits budget."""
    candidates = [m * 128 for m in range(HW // 128, 0, -1) if HW % (m * 128) == 0]
    if not candidates:
        return HW  # HW not a multiple of 128: single full-HW block
    for tile in candidates:  # largest first
        if C * tile * itemsize <= budget_bytes:
            return tile
    return candidates[-1]  # nothing fits budget -> smallest legal tile


# ----------------------------- fused kernel (small slabs) -------------------

def _se_fused_kernel(x_ref, w_ref, o_ref, *, hid):
    """Whole-slab SE: o = x * sigmoid(W2 @ relu(W1 @ mean_hw(x))).

    x_ref : (bb, C, HW)  channels on sublanes, HW on lanes (lane-dense)
    w_ref : (C, 2*hid)   [:, :hid] = fc1.weight.T, [:, hid:] = fc2.weight
    o_ref : (bb, C, HW)
    """
    w1t = w_ref[:, :hid]                                            # (C, hid)
    w2 = w_ref[:, hid:]                                             # (C, hid)
    for i in range(x_ref.shape[0]):      # static unroll over in-block batch dim
        # AdaptiveAvgPool2d(1): cast inside the reduction; no long-lived f32 slab.
        pooled = jnp.mean(x_ref[i].astype(jnp.float32), axis=1, keepdims=True)  # (C,1)
        # fc1 + ReLU (VPU mul + sublane reduce) -- keep off the MXU (1-row LHS).
        h = jnp.maximum(jnp.sum(w1t * pooled, axis=0, keepdims=True), 0.0)      # (1,hid)
        # fc2 + Sigmoid (VPU mul + lane reduce, EUP sigmoid).
        gate = jax.nn.sigmoid(jnp.sum(w2 * h, axis=1, keepdims=True))           # (C,1)
        # Channel-wise scale; do it in the output dtype (bf16 scale on v6e/v7x).
        gate = gate if o_ref.dtype == jnp.float32 else gate.astype(o_ref.dtype)
        o_ref[i] = (x_ref[i] * gate).astype(o_ref.dtype)


def _se_fused(x3, wpack, hid, vmem_limit_bytes):
    B, C, HW = x3.shape
    tcs = _tensorcores_per_chip()
    if tcs >= 2 and B >= tcs and B % tcs == 0:
        steps, bb, sems = tcs, B // tcs, ("parallel",)   # v7x: one slab per core
    else:
        steps, bb, sems = 1, B, ("arbitrary",)           # v5e/v6e: collapse grid

    cp = dict(dimension_semantics=sems)
    if vmem_limit_bytes is not None:
        cp["vmem_limit_bytes"] = vmem_limit_bytes

    return pl.pallas_call(
        functools.partial(_se_fused_kernel, hid=hid),
        out_shape=jax.ShapeDtypeStruct((B, C, HW), x3.dtype),
        grid=(steps,),
        in_specs=[
            pl.BlockSpec((bb, C, HW), lambda b: (b, 0, 0)),
            pl.BlockSpec((C, 2 * hid), lambda b: (0, 0)),
        ],
        out_specs=pl.BlockSpec((bb, C, HW), lambda b: (b, 0, 0)),
        input_output_aliases={0: 0},
        compiler_params=pltpu.CompilerParams(**cp),
    )(x3, wpack)


# ----------------------------- streaming kernel (production sizes) ----------

def _se_stream_kernel(x_ref, w_ref, o_ref, acc_ref, gate_ref, *, hid, inv_hw):
    """Two-phase HW-tile streaming SE.

    grid = (B, 2, T): phase 0 accumulates per-channel sums across HW tiles,
    phase 1 computes the gate once (at t==0) and streams the channel scale.
    x_ref : (1, C, hw_tile)   o_ref : (1, C, hw_tile)
    acc_ref, gate_ref : (C, 1) f32 VMEM scratch (persist across grid steps)
    """
    p = pl.program_id(1)
    t = pl.program_id(2)

    @pl.when(jnp.logical_and(p == 0, t == 0))
    def _():
        acc_ref[...] = jnp.zeros_like(acc_ref)

    @pl.when(p == 0)
    def _():
        acc_ref[...] += jnp.sum(x_ref[0].astype(jnp.float32), axis=1, keepdims=True)

    @pl.when(jnp.logical_and(p == 1, t == 0))
    def _():
        pooled = acc_ref[...] * inv_hw                                   # (C,1)
        w1t = w_ref[:, :hid]
        w2 = w_ref[:, hid:]
        h = jnp.maximum(jnp.sum(w1t * pooled, axis=0, keepdims=True), 0.0)
        gate_ref[...] = jax.nn.sigmoid(jnp.sum(w2 * h, axis=1, keepdims=True))

    @pl.when(p == 1)
    def _():
        gate = gate_ref[...]
        gate = gate if o_ref.dtype == jnp.float32 else gate.astype(o_ref.dtype)
        o_ref[0] = (x_ref[0] * gate).astype(o_ref.dtype)


def _se_stream(x3, wpack, hid, hw_tile, vmem_limit_bytes):
    B, C, HW = x3.shape
    if hw_tile is None:
        hw_tile = _pick_hw_tile(C, HW, x3.dtype.itemsize)
    assert HW % hw_tile == 0 and (hw_tile % 128 == 0 or hw_tile == HW), (HW, hw_tile)
    T = HW // hw_tile

    cp = dict(dimension_semantics=("parallel", "arbitrary", "arbitrary"))
    if vmem_limit_bytes is not None:
        cp["vmem_limit_bytes"] = vmem_limit_bytes

    return pl.pallas_call(
        functools.partial(_se_stream_kernel, hid=hid, inv_hw=1.0 / HW),
        out_shape=jax.ShapeDtypeStruct((B, C, HW), x3.dtype),
        grid=(B, 2, T),
        in_specs=[
            pl.BlockSpec((1, C, hw_tile), lambda b, p, t: (b, 0, t)),
            pl.BlockSpec((C, 2 * hid), lambda b, p, t: (0, 0)),
        ],
        # phase 0 parks on block (b, 0, 0) (never flushed, since the index only
        # changes after phase 1 / t==0 has written it); phase 1 streams tiles.
        out_specs=pl.BlockSpec((1, C, hw_tile), lambda b, p, t: (b, 0, p * t)),
        scratch_shapes=[
            pltpu.VMEM((C, 1), jnp.float32),   # running per-channel sum
            pltpu.VMEM((C, 1), jnp.float32),   # gate
        ],
        input_output_aliases={0: 0},
        compiler_params=pltpu.CompilerParams(**cp),
    )(x3, wpack)


# ----------------------------- wrapper ---------------------------------------

def se_forward(x_nchw, w1, w2, *, force_stream=False, hw_tile=None,
               vmem_limit_bytes=None):
    """SE forward. x_nchw: (B, C, H, W); w1 = fc1.weight (hid, C); w2 = fc2.weight (C, hid)."""
    B, C, H, W = x_nchw.shape
    hid = w1.shape[0]
    HW = H * W

    x3 = x_nchw.reshape(B, C, HW)                      # free reshape, stays NCHW-ordered
    wpack = jnp.concatenate([w1.T, w2], axis=1)        # (C, 2*hid): one padded block / DMA

    slab_bytes = C * HW * x_nchw.dtype.itemsize
    use_stream = force_stream or (slab_bytes > _FUSED_SLAB_LIMIT_BYTES and HW % 128 == 0)

    if use_stream:
        out = _se_stream(x3, wpack, hid, hw_tile, vmem_limit_bytes)
    else:
        out = _se_fused(x3, wpack, hid, vmem_limit_bytes)
    return out.reshape(B, C, H, W)


# ----------------------------- reference (pure JAX) -------------------------

def se_reference(x_nchw, w1, w2):
    y = jnp.mean(x_nchw, axis=(2, 3))                  # (B, C)
    y = jnp.maximum(y @ w1.T, 0.0)                     # (B, hid)
    y = jax.nn.sigmoid(y @ w2.T)                       # (B, C)
    return x_nchw * y[:, :, None, None]


# ----------------------------- main ------------------------------------------

if __name__ == "__main__":
    B, C, H, W = 2, 32, 16, 16
    reduction = 16
    hid = C // reduction                               # = 2

    key = jax.random.PRNGKey(0)
    kx, k1, k2 = jax.random.split(key, 3)
    x = jax.random.normal(kx, (B, C, H, W), jnp.float32)
    # PyTorch Linear weights: fc[0].weight (hid, C), fc[2].weight (C, hid), no bias.
    w1 = jax.random.normal(k1, (hid, C), jnp.float32) / jnp.sqrt(float(C))
    w2 = jax.random.normal(k2, (C, hid), jnp.float32) / jnp.sqrt(float(hid))

    # Fused path (collapsed grid on v5e/v6e, parallel-over-B on v7x).
    out = jax.block_until_ready(jax.jit(se_forward)(x, w1, w2))
    assert out.shape == (B, C, H, W), out.shape
    ref = se_reference(x, w1, w2)
    assert jnp.allclose(out, ref, atol=1e-5, rtol=1e-5), float(
        jnp.max(jnp.abs(out - ref)))

    # HW-tile streaming path (the production-size structure), exercised at a
    # modest shape: HW=1024 split into 4 tiles of 256.
    x_big = jax.random.normal(kx, (B, C, 32, 32), jnp.float32)
    stream_fn = jax.jit(
        lambda a, b, c: se_forward(a, b, c, force_stream=True, hw_tile=256))
    out_big = jax.block_until_ready(stream_fn(x_big, w1, w2))
    ref_big = se_reference(x_big, w1, w2)
    assert jnp.allclose(out_big, ref_big, atol=1e-5, rtol=1e-5), float(
        jnp.max(jnp.abs(out_big - ref_big)))

    print("KERNEL_OK")
</pallas_src>

<mosaic_0001>
module attributes {stable_mosaic.version = 11 : i64} {
  func.func @_se_fused_kernel(%arg0: i32, %arg1: memref<2x32x256xf32, #tpu.memory_space<vmem>>, %arg2: memref<32x4xf32, #tpu.memory_space<vmem>>, %arg3: memref<2x32x256xf32, #tpu.memory_space<vmem>>) attributes {dimension_semantics = [#tpu.dimension_semantics<arbitrary>], iteration_bounds = array<i64: 1>, scalar_prefetch = 0 : i64, scratch_operands = 0 : i64, tpu.core_type = #tpu.core_type<tc>, window_params = [{transform_indices = @transform_0, window_bounds = array<i64: 2, 32, 256>}, {pipeline_mode = #tpu.pipeline_mode<synchronous>, transform_indices = @transform_1, window_bounds = array<i64: 32, 4>}, {transform_indices = @transform_2, window_bounds = array<i64: 2, 32, 256>}]} {
    %c0 = arith.constant 0 : index
    %c0_0 = arith.constant 0 : index
    %0 = vector.load %arg2[%c0, %c0_0] : memref<32x4xf32, #tpu.memory_space<vmem>>, vector<32x2xf32>
    %c0_1 = arith.constant 0 : index
    %c2 = arith.constant 2 : index
    %1 = vector.load %arg2[%c0_1, %c2] : memref<32x4xf32, #tpu.memory_space<vmem>>, vector<32x2xf32>
    %c0_2 = arith.constant 0 : index
    %c0_3 = arith.constant 0 : index
    %c0_4 = arith.constant 0 : index
    %2 = vector.load %arg1[%c0_2, %c0_3, %c0_4] : memref<2x32x256xf32, #tpu.memory_space<vmem>>, vector<1x32x256xf32>
    %3 = vector.shape_cast %2 : vector<1x32x256xf32> to vector<32x256xf32>
    %cst = arith.constant dense<0.000000e+00> : vector<32xf32>
    %4 = vector.multi_reduction <add>, %3, %cst [1] : vector<32x256xf32> to vector<32xf32>
    %5 = vector.shape_cast %4 : vector<32xf32> to vector<32x1xf32>
    %cst_5 = arith.constant 2.560000e+02 : f32
    %6 = vector.broadcast %cst_5 : f32 to vector<32x1xf32>
    %7 = arith.divf %5, %6 : vector<32x1xf32>
    %8 = vector.broadcast %7 : vector<32x1xf32> to vector<32x2xf32>
    %9 = arith.mulf %0, %8 : vector<32x2xf32>
    %cst_6 = arith.constant dense<0.000000e+00> : vector<2xf32>
    %10 = vector.multi_reduction <add>, %9, %cst_6 [0] : vector<32x2xf32> to vector<2xf32>
    %11 = vector.shape_cast %10 : vector<2xf32> to vector<1x2xf32>
    %cst_7 = arith.constant 0.000000e+00 : f32
    %12 = vector.broadcast %cst_7 : f32 to vector<1x2xf32>
    %13 = arith.maximumf %11, %12 : vector<1x2xf32>
    %14 = vector.broadcast %13 : vector<1x2xf32> to vector<32x2xf32>
    %15 = arith.mulf %1, %14 : vector<32x2xf32>
    %cst_8 = arith.constant dense<0.000000e+00> : vector<32xf32>
    %16 = vector.multi_reduction <add>, %15, %cst_8 [1] : vector<32x2xf32> to vector<32xf32>
    %17 = vector.shape_cast %16 : vector<32xf32> to vector<32x1xf32>
    %18 = arith.negf %17 : vector<32x1xf32>
    %19 = math.exp %18 : vector<32x1xf32>
    %cst_9 = arith.constant 1.000000e+00 : f32
    %20 = vector.broadcast %cst_9 : f32 to vector<32x1xf32>
    %21 = arith.addf %20, %19 : vector<32x1xf32>
    %22 = arith.divf %20, %21 : vector<32x1xf32>
    %c0_10 = arith.constant 0 : index
    %c0_11 = arith.constant 0 : index
    %c0_12 = arith.constant 0 : index
    %23 = vector.load %arg1[%c0_10, %c0_11, %c0_12] : memref<2x32x256xf32, #tpu.memory_space<vmem>>, vector<1x32x256xf32>
    %24 = vector.shape_cast %23 : vector<1x32x256xf32> to vector<32x256xf32>
    %25 = vector.broadcast %22 : vector<32x1xf32> to vector<32x256xf32>
    %26 = arith.mulf %24, %25 : vector<32x256xf32>
    %c0_13 = arith.constant 0 : index
    %c0_14 = arith.constant 0 : index
    %c0_15 = arith.constant 0 : index
    %27 = vector.load %arg3[%c0_13, %c0_14, %c0_15] : memref<2x32x256xf32, #tpu.memory_space<vmem>>, vector<1x32x256xf32>
    %28 = vector.shape_cast %27 : vector<1x32x256xf32> to vector<32x256xf32>
    %29 = vector.shape_cast %26 : vector<32x256xf32> to vector<1x32x256xf32>
    tpu.vector_store %arg3[%c0_13, %c0_14, %c0_15], %29 {strides = array<i32>} : memref<2x32x256xf32, #tpu.memory_space<vmem>>, vector<1x32x256xf32>,
    %c1 = arith.constant 1 : index
    %c0_16 = arith.constant 0 : index
    %c0_17 = arith.constant 0 : index
    %30 = vector.load %arg1[%c1, %c0_16, %c0_17] : memref<2x32x256xf32, #tpu.memory_space<vmem>>, vector<1x32x256xf32>
    %31 = vector.shape_cast %30 : vector<1x32x256xf32> to vector<32x256xf32>
    %cst_18 = arith.constant dense<0.000000e+00> : vector<32xf32>
    %32 = vector.multi_reduction <add>, %31, %cst_18 [1] : vector<32x256xf32> to vector<32xf32>
    %33 = vector.shape_cast %32 : vector<32xf32> to vector<32x1xf32>
    %cst_19 = arith.constant 2.560000e+02 : f32
    %34 = vector.broadcast %cst_19 : f32 to vector<32x1xf32>
    %35 = arith.divf %33, %34 : vector<32x1xf32>
    %36 = vector.broadcast %35 : vector<32x1xf32> to vector<32x2xf32>
    %37 = arith.mulf %0, %36 : vector<32x2xf32>
    %cst_20 = arith.constant dense<0.000000e+00> : vector<2xf32>
    %38 = vector.multi_reduction <add>, %37, %cst_20 [0] : vector<32x2xf32> to vector<2xf32>
    %39 = vector.shape_cast %38 : vector<2xf32> to vector<1x2xf32>
    %cst_21 = arith.constant 0.000000e+00 : f32
    %40 = vector.broadcast %cst_21 : f32 to vector<1x2xf32>
    %41 = arith.maximumf %39, %40 : vector<1x2xf32>
    %42 = vector.broadcast %41 : vector<1x2xf32> to vector<32x2xf32>
    %43 = arith.mulf %1, %42 : vector<32x2xf32>
    %cst_22 = arith.constant dense<0.000000e+00> : vector<32xf32>
    %44 = vector.multi_reduction <add>, %43, %cst_22 [1] : vector<32x2xf32> to vector<32xf32>
    %45 = vector.shape_cast %44 : vector<32xf32> to vector<32x1xf32>
    %46 = arith.negf %45 : vector<32x1xf32>
    %47 = math.exp %46 : vector<32x1xf32>
    %cst_23 = arith.constant 1.000000e+00 : f32
    %48 = vector.broadcast %cst_23 : f32 to vector<32x1xf32>
    %49 = arith.addf %48, %47 : vector<32x1xf32>
    %50 = arith.divf %48, %49 : vector<32x1xf32>
    %c1_24 = arith.constant 1 : index
    %c0_25 = arith.constant 0 : index
    %c0_26 = arith.constant 0 : index
    %51 = vector.load %arg1[%c1_24, %c0_25, %c0_26] : memref<2x32x256xf32, #tpu.memory_space<vmem>>, vector<1x32x256xf32>
    %52 = vector.shape_cast %51 : vector<1x32x256xf32> to vector<32x256xf32>
    %53 = vector.broadcast %50 : vector<32x1xf32> to vector<32x256xf32>
    %54 = arith.mulf %52, %53 : vector<32x256xf32>
    %c1_27 = arith.constant 1 : index
    %c0_28 = arith.constant 0 : index
    %c0_29 = arith.constant 0 : index
    %55 = vector.load %arg3[%c1_27, %c0_28, %c0_29] : memref<2x32x256xf32, #tpu.memory_space<vmem>>, vector<1x32x256xf32>
    %56 = vector.shape_cast %55 : vector<1x32x256xf32> to vector<32x256xf32>
    %57 = vector.shape_cast %54 : vector<32x256xf32> to vector<1x32x256xf32>
    tpu.vector_store %arg3[%c1_27, %c0_28, %c0_29], %57 {strides = array<i32>} : memref<2x32x256xf32, #tpu.memory_space<vmem>>, vector<1x32x256xf32>,
    return
  }
  func.func @transform_0(%arg0: i32) -> (i32, i32, i32) {
    %c0_i32 = arith.constant 0 : i32
    %c0_i32_0 = arith.constant 0 : i32
    %c0_i32_1 = arith.constant 0 : i32
    return %arg0, %c0_i32, %c0_i32_0 : i32, i32, i32
  }
  func.func @transform_1(%arg0: i32) -> (i32, i32) {
    %c0_i32 = arith.constant 0 : i32
    %c0_i32_0 = arith.constant 0 : i32
    %c0_i32_1 = arith.constant 0 : i32
    return %c0_i32, %c0_i32_0 : i32, i32
  }
  func.func @transform_2(%arg0: i32) -> (i32, i32, i32) {
    %c0_i32 = arith.constant 0 : i32
    %c0_i32_0 = arith.constant 0 : i32
    %c0_i32_1 = arith.constant 0 : i32
    return %arg0, %c0_i32, %c0_i32_0 : i32, i32, i32
  }
}

</mosaic_0001>

<bundles_post_ra>
// kernel: se_forward.1
= control target key start
LH: loop header
LB: loop body
LE: loop exit
PB: predicated region body
PF: predicated region fallthrough
CT: control target
= control target key end

     0   :  { %vm44_vm0 = vcmask 15360   ;;  %s318_s20 = smov 126   ;;  %s534_s0 = inlined_call_operand.vmem [shape: f32[2,32,256], index: 0, kind: input, shape index: {}, may-alias: {0,2}]   ;;  %s535_s1 = inlined_call_operand.vmem [shape: f32[32,4], index: 1, kind: input, shape index: {}]   ;;  %s536_s2 = inlined_call_operand.vmem [shape: f32[2,32,256], index: 2, kind: output, shape index: {}, may-alias: {0,2}]  }
   0x1   :  { %v337_v0 = vld [vmem:[%s534_s0 + $0x40] sm:$0xff]  ;;  %v342_v1 = vld [vmem:[%s534_s0 + $0x48] sm:$0xff]  ;;  %v359_v5 = vld [vmem:[%s534_s0 + $0x50] sm:$0xff] }
   0x2   :  { %v347_v2 = vld [vmem:[%s534_s0] sm:$0xff]  ;;  %v144_v3 = vadd.f32 %v342_v1, %v337_v0  ;;  %v354_v4 = vld [vmem:[%s534_s0 + $0x8] sm:$0xff]  ;;  %v364_v6 = vld [vmem:[%s534_s0 + $0x58] sm:$0xff] }
   0x3   :  { %v23_v7 = vadd.f32 %v354_v4, %v347_v2  ;;  %v371_v8 = vld [vmem:[%s534_s0 + $0x10] sm:$0xff]  ;;  %v376_v9 = vld [vmem:[%s534_s0 + $0x18] sm:$0xff]  ;;  %v147_v10 = vadd.f32 %v364_v6, %v359_v5  ;;  %v385_v12 = vld [vmem:[%s534_s0 + $0x60] sm:$0xff] }
   0x4   :  { %145 = vadd.xlane.f32.xlu1 %v144_v3  ;;  %v26_v11 = vadd.f32 %v376_v9, %v371_v8  ;;  %v390_v13 = vld [vmem:[%s534_s0 + $0x68] sm:$0xff]  ;;  %v395_v14 = vld [vmem:[%s534_s0 + $0x20] sm:$0xff]  ;;  %v409_v18 = vld [vmem:[%s534_s0 + $0x70] sm:$0xff] }
   0x5   :  { %24 = vadd.xlane.f32.xlu0 %v23_v7  ;;  %v400_v15 = vld [vmem:[%s534_s0 + $0x28] sm:$0xff]  ;;  %v150_v16 = vadd.f32 %v390_v13, %v385_v12  ;;  %v414_v19 = vld [vmem:[%s534_s0 + $0x78] sm:$0xff]  ;;  %v419_v20 = vld [vmem:[%s534_s0 + $0x30] sm:$0xff] }
   0x6   :  { %v29_v17 = vadd.f32 %v400_v15, %v395_v14  ;;  %v424_v21 = vld [vmem:[%s534_s0 + $0x38] sm:$0xff]  ;;  %v153_v22 = vadd.f32 %v414_v19, %v409_v18  ;;  %v433_v27 = vld [vmem:[%s535_s1] sm:$0xff]  ;;  %v439_v30 = vld [vmem:[%s535_s1 + $0x8] sm:$0xff] }
   0x7   :  { %v32_v23 = vadd.f32 %v424_v21, %v419_v20  ;;  %v13_v40 = vld [vmem:[%s535_s1 + $0x10] sm:$0xff]  ;;  %v14_v49 = vld [vmem:[%s535_s1 + $0x18] sm:$0xff]  ;;  %s317_s1 = smov 2  }
   0x8   :  { %148 = vadd.xlane.f32.xlu1 %v147_v10 }
   0x9   :  { %27 = vadd.xlane.f32.xlu0 %v26_v11 }
   0xc   :  { %151 = vadd.xlane.f32.xlu1 %v150_v16 }
   0xd   :  { %30 = vadd.xlane.f32.xlu0 %v29_v17 }
  0x10   :  { %154 = vadd.xlane.f32.xlu1 %v153_v22 }
  0x11   :  { %33 = vadd.xlane.f32.xlu0 %v32_v23 }
  0x8d   :  { %v146_v24 = vpop.xlane.xlu1 %145 }
  0x8e   :  { %v156_v25 = vmul.f32 0.00390625, %v146_v24  ;;  %v25_v26 = vpop.xlane.xlu0 %24 }
  0x8f   :  { %v36_v33 = vmul.f32 0.00390625, %v25_v26 }
  0x90   :  { %v160_v28 = vmul.f32 %v156_v25, %v433_v27 }
  0x91   :  { %v149_v29 = vpop.xlane.xlu1 %148  ;;  %v40_v43 = vmul.f32 %v36_v33, %v433_v27 }
  0x92   :  { %v157_v31 = vmul.f32 0.00390625, %v149_v29  ;;  %v28_v32 = vpop.xlane.xlu0 %27  ;;  %v164_v35 = vsel %vm44_vm0, %v160_v28, 0.0 }
  0x93   :  { %v37_v34 = vmul.f32 0.00390625, %v28_v32  ;;  %v45_v54 = vsel %vm44_vm0, %v40_v43, 0.0 }
  0x94   :  { %v161_v36 = vmul.f32 %v157_v31, %v439_v30 }
  0x95   :  { %v41_v37 = vmul.f32 %v37_v34, %v439_v30  ;;  %v152_v38 = vpop.xlane.xlu1 %151 }
  0x96   :  { %v165_v39 = vsel %vm44_vm0, %v161_v36, 0.0  ;;  %v158_v41 = vmul.f32 0.00390625, %v152_v38  ;;  %v31_v42 = vpop.xlane.xlu0 %30 }
  0x97   :  { %v166_v44 = vadd.f32 %v165_v39, %v164_v35  ;;  %v38_v45 = vmul.f32 0.00390625, %v31_v42  ;;  %v46_v47 = vsel %vm44_vm0, %v41_v37, 0.0 }
  0x98   :  { %v162_v46 = vmul.f32 %v158_v41, %v13_v40  ;;  %v47_v58 = vadd.f32 %v46_v47, %v45_v54 }
  0x99   :  { %v42_v48 = vmul.f32 %v38_v45, %v13_v40  ;;  %v155_v50 = vpop.xlane.xlu1 %154 }
  0x9a   :  { %v167_v51 = vsel %vm44_vm0, %v162_v46, 0.0  ;;  %v159_v52 = vmul.f32 0.00390625, %v155_v50  ;;  %v34_v53 = vpop.xlane.xlu0 %33 }
  0x9b   :  { %v168_v55 = vadd.f32 %v167_v51, %v166_v44  ;;  %v48_v56 = vsel %vm44_vm0, %v42_v48, 0.0  ;;  %v39_v57 = vmul.f32 0.00390625, %v34_v53 }
  0x9c   :  { %v163_v59 = vmul.f32 %v159_v52, %v14_v49  ;;  %v49_v61 = vadd.f32 %v48_v56, %v47_v58 }
  0x9d   :  { %v43_v60 = vmul.f32 %v39_v57, %v14_v49 }
  0x9e   :  { %v169_v62 = vsel %vm44_vm0, %v163_v59, 0.0 }
  0x9f   :  { %v170_v63 = vadd.f32 %v169_v62, %v168_v55  ;;  %v50_v3 = vsel %vm44_vm0, %v43_v60, 0.0 }
  0xa0   :  { %v51_v7 = vadd.f32 %v50_v3, %v49_v61 }
  0xa1   :  { %v171_v10 = vrot.slane %v170_v63, 4 }
  0xa2   :  { %v52_v11 = vrot.slane %v51_v7, 4 }
  0xa3   :  { %v172_v16 = vadd.f32 %v171_v10, %v170_v63 }
  0xa4   :  { %v53_v17 = vadd.f32 %v52_v11, %v51_v7 }
  0xa5   :  { %v173_v22 = vrot.slane %v172_v16, 2 }
  0xa6   :  { %v54_v23 = vrot.slane %v53_v17, 2 }
  0xa7   :  { %v174_v24 = vadd.f32 %v173_v22, %v172_v16 }
  0xa8   :  { %v55_v25 = vadd.f32 %v54_v23, %v53_v17 }
  0xa9   :  { %v175_v26 = vrot.slane %v174_v24, 1 }
  0xaa   :  { %v56_v28 = vrot.slane %v55_v25, 1 }
  0xab   :  { %v176_v29 = vadd.f32 %v175_v26, %v174_v24 }
  0xac   :  { %v57_v31 = vadd.f32 %v56_v28, %v55_v25 }
  0xad   :  { %v177_v32 = vmax.f32 %v176_v29, 0.0 }
  0xae   :  { %v58_v33 = vmax.f32 %v57_v31, 0.0 }
  0xaf   :  { %179 = vrot.lane.b32.xlu1 %v177_v32, %s317_s1 }
  0xb0   :  { %60 = vrot.lane.b32.xlu0 %v58_v33, %s317_s1 }
 0x121   :  { %v180_v37 = vpop.permute.xlu1 %179 }
 0x122   :  { %v61_v34 = vpop.permute.xlu0 %60  ;;  %v182_v38 = vmul.f32 %v180_v37, %v433_v27  ;;  %v184_v41 = vmul.f32 %v180_v37, %v13_v40  ;;  %v183_v43 = vmul.f32 %v180_v37, %v439_v30  ;;  %v185_v44 = vmul.f32 %v180_v37, %v14_v49 }
 0x123   :  { %v65_v35 = vmul.f32 %v61_v34, %v13_v40  ;;  %v63_v36 = vmul.f32 %v61_v34, %v433_v27  ;;  %v64_v39 = vmul.f32 %v61_v34, %v439_v30  ;;  %v66_v42 = vmul.f32 %v61_v34, %v14_v49 }
 0x125   :  { %75 = vrot.lane.b32.xlu0 %v65_v35, %s318_s20  ;;  %71 = vrot.lane.b32.xlu1 %v63_v36, %s318_s20 }
 0x129   :  { %190 = vrot.lane.b32.xlu0 %v182_v38, %s318_s20  ;;  %73 = vrot.lane.b32.xlu1 %v64_v39, %s318_s20 }
 0x12d   :  { %194 = vrot.lane.b32.xlu0 %v184_v41, %s318_s20  ;;  %77 = vrot.lane.b32.xlu1 %v66_v42, %s318_s20 }
 0x131   :  { %192 = vrot.lane.b32.xlu1 %v183_v43, %s318_s20 }
 0x135   :  { %196 = vrot.lane.b32.xlu1 %v185_v44, %s318_s20 }
 0x197   :  { %v72_v45 = vpop.permute.xlu1 %71  ;;  %v76_v47 = vpop.permute.xlu0 %75 }
 0x198   :  { %v83_v46 = vsel %vm44_vm0, %v72_v45, 0.0  ;;  %v89_v27 = vsel %vm44_vm0, %v76_v47, 0.0 }
 0x199   :  { %84 = vadd.xlane.f32.xlu0 %v83_v46 }
 0x19b   :  { %v74_v48 = vpop.permute.xlu1 %73  ;;  %v191_v40 = vpop.permute.xlu0 %190 }
 0x19c   :  { %v86_v50 = vsel %vm44_vm0, %v74_v48, 0.0  ;;  %v202_v49 = vsel %vm44_vm0, %v191_v40, 0.0 }
 0x19d   :  { %90 = vadd.xlane.f32.xlu0 %v89_v27  ;;  %87 = vadd.xlane.f32.xlu1 %v86_v50 }
 0x19f   :  { %v78_v51 = vpop.permute.xlu1 %77  ;;  %v195_v54 = vpop.permute.xlu0 %194 }
 0x1a0   :  { %v92_v52 = vsel %vm44_vm0, %v78_v51, 0.0  ;;  %v208_v56 = vsel %vm44_vm0, %v195_v54, 0.0 }
 0x1a1   :  { %93 = vadd.xlane.f32.xlu0 %v92_v52 }
 0x1a3   :  { %v193_v30 = vpop.permute.xlu1 %192 }
 0x1a4   :  { %v205_v53 = vsel %vm44_vm0, %v193_v30, 0.0 }
 0x1a5   :  { %203 = vadd.xlane.f32.xlu0 %v202_v49  ;;  %206 = vadd.xlane.f32.xlu1 %v205_v53 }
 0x1a7   :  { %v197_v55 = vpop.permute.xlu1 %196 }
 0x1a8   :  { %v211_v57 = vsel %vm44_vm0, %v197_v55, 0.0 }
 0x1a9   :  { %209 = vadd.xlane.f32.xlu0 %v208_v56  ;;  %212 = vadd.xlane.f32.xlu1 %v211_v57 }
 0x222   :  { %v85_v58 = vpop.xlane.xlu0 %84 }
 0x223   :  { %v259_v59 = vmul.f32 -1.442695, %v85_v58 }
 0x225   :  { %285 = vpow2.f32 %v259_v59 }
 0x226   :  { %v91_v60 = vpop.xlane.xlu0 %90  ;;  %v88_v61 = vpop.xlane.xlu1 %87 }
 0x227   :  { %v261_v62 = vmul.f32 -1.442695, %v91_v60  ;;  %v260_v63 = vmul.f32 -1.442695, %v88_v61 }
 0x229   :  { %287 = vpow2.f32 %v261_v62 }
 0x22a   :  { %289 = vpow2.f32 %v260_v63  ;;  %v94_v3 = vpop.xlane.xlu0 %93 }
 0x22b   :  { %v262_v7 = vmul.f32 -1.442695, %v94_v3 }
 0x22d   :  { %291 = vpow2.f32 %v262_v7 }
 0x22e   :  { %v204_v10 = vpop.xlane.xlu0 %203  ;;  %v207_v11 = vpop.xlane.xlu1 %206 }
 0x22f   :  { %v271_v16 = vmul.f32 -1.442695, %v204_v10  ;;  %v272_v17 = vmul.f32 -1.442695, %v207_v11 }
 0x231   :  { %293 = vpow2.f32 %v271_v16 }
 0x232   :  { %v286_v22 = vpop.eup %285  ;;  %295 = vpow2.f32 %v272_v17  ;;  %v210_v23 = vpop.xlane.xlu0 %209 }
 0x233   :  { %v213_v24 = vpop.xlane.xlu1 %212  ;;  %v107_v25 = vadd.f32 1.0, %v286_v22  ;;  %v273_v26 = vmul.f32 -1.442695, %v210_v23 }
 0x234   :  { %v274_v28 = vmul.f32 -1.442695, %v213_v24 }
 0x235   :  { %297 = vrcp.f32 %v107_v25 }
 0x236   :  { %v288_v29 = vpop.eup %287  ;;  %299 = vpow2.f32 %v273_v26 }
 0x237   :  { %v290_v31 = vpop.eup %289  ;;  %v109_v32 = vadd.f32 1.0, %v288_v29  ;;  %301 = vpow2.f32 %v274_v28 }
 0x238   :  { %v108_v33 = vadd.f32 1.0, %v290_v31 }
 0x239   :  { %303 = vrcp.f32 %v109_v32 }
 0x23a   :  { %v292_v34 = vpop.eup %291  ;;  %305 = vrcp.f32 %v108_v33 }
 0x23b   :  { %v110_v35 = vadd.f32 1.0, %v292_v34 }
 0x23d   :  { %307 = vrcp.f32 %v110_v35 }
 0x23e   :  { %v294_v36 = vpop.eup %293 }
 0x23f   :  { %v296_v37 = vpop.eup %295  ;;  %v226_v38 = vadd.f32 1.0, %v294_v36 }
 0x240   :  { %v227_v39 = vadd.f32 1.0, %v296_v37 }
 0x241   :  { %309 = vrcp.f32 %v226_v38 }
 0x242   :  { %v298_v41 = vpop.eup %297  ;;  %311 = vrcp.f32 %v227_v39 }
 0x243   :  { %v300_v42 = vpop.eup %299  ;;  %v119_v43 = vmul.f32 %v298_v41, %v347_v2  ;;  %v120_v44 = vmul.f32 %v298_v41, %v354_v4 }
 0x244   :  { %v302_v45 = vpop.eup %301  ;;  %v228_v46 = vadd.f32 1.0, %v300_v42 }
 0x245   :  { %127 = vst [vmem:[%s536_s2] sm:$0xff] %v119_v43  ;;  %128 = vst [vmem:[%s536_s2 + $0x8] sm:$0xff] %v120_v44  ;;  %v229_v47 = vadd.f32 1.0, %v302_v45 }
 0x246   :  { %v304_v48 = vpop.eup %303  ;;  %313 = vrcp.f32 %v228_v46 }
 0x247   :  { %v306_v27 = vpop.eup %305  ;;  %v123_v50 = vmul.f32 %v304_v48, %v395_v14  ;;  %v124_v2 = vmul.f32 %v304_v48, %v400_v15  ;;  %315 = vrcp.f32 %v229_v47 }
 0x248   :  { %v121_v4 = vmul.f32 %v306_v27, %v371_v8  ;;  %v122_v40 = vmul.f32 %v306_v27, %v376_v9 }
 0x249   :  { %131 = vst [vmem:[%s536_s2 + $0x20] sm:$0xff] %v123_v50  ;;  %132 = vst [vmem:[%s536_s2 + $0x28] sm:$0xff] %v124_v2 }
 0x24a   :  { %v308_v51 = vpop.eup %307  ;;  %129 = vst [vmem:[%s536_s2 + $0x10] sm:$0xff] %v121_v4  ;;  %130 = vst [vmem:[%s536_s2 + $0x18] sm:$0xff] %v122_v40 }
 0x24b   :  { %v125_v8 = vmul.f32 %v308_v51, %v419_v20  ;;  %v126_v9 = vmul.f32 %v308_v51, %v424_v21 }
 0x24d   :  { %133 = vst [vmem:[%s536_s2 + $0x30] sm:$0xff] %v125_v8  ;;  %134 = vst [vmem:[%s536_s2 + $0x38] sm:$0xff] %v126_v9 }
 0x24e   :  { %v310_v14 = vpop.eup %309 }
 0x24f   :  { %v312_v15 = vpop.eup %311  ;;  %v238_v52 = vmul.f32 %v310_v14, %v337_v0  ;;  %v239_v30 = vmul.f32 %v310_v14, %v342_v1 }
 0x250   :  { %v240_v49 = vmul.f32 %v312_v15, %v359_v5  ;;  %v241_v20 = vmul.f32 %v312_v15, %v364_v6 }
 0x251   :  { %275 = vst [vmem:[%s536_s2 + $0x40] sm:$0xff] %v238_v52  ;;  %276 = vst [vmem:[%s536_s2 + $0x48] sm:$0xff] %v239_v30 }
 0x252   :  { %277 = vst [vmem:[%s536_s2 + $0x50] sm:$0xff] %v240_v49  ;;  %278 = vst [vmem:[%s536_s2 + $0x58] sm:$0xff] %v241_v20 }
 0x253   :  { %v314_v0 = vpop.eup %313 }
 0x254   :  { %v316_v1 = vpop.eup %315  ;;  %v242_v5 = vmul.f32 %v314_v0, %v385_v12  ;;  %v243_v6 = vmul.f32 %v314_v0, %v390_v13 }
 0x255   :  { %v244_v21 = vmul.f32 %v316_v1, %v409_v18  ;;  %v245_v53 = vmul.f32 %v316_v1, %v414_v19 }
 0x256   :  { %279 = vst [vmem:[%s536_s2 + $0x60] sm:$0xff] %v242_v5  ;;  %280 = vst [vmem:[%s536_s2 + $0x68] sm:$0xff] %v243_v6 }
 0x257   :  { %281 = vst [vmem:[%s536_s2 + $0x70] sm:$0xff] %v244_v21  ;;  %282 = vst [vmem:[%s536_s2 + $0x78] sm:$0xff] %v245_v53 }

</bundles_post_ra>
